<compile_context>
chip_gen: v6e
topology: v6e:2x2x1
jax: 0.10.0
libtpu: 0.0.40
codegen_flags: <defaults>
</compile_context>

<pallas_src>
import jax
import jax.numpy as jnp
from jax.experimental import pallas as pl
from jax.experimental.pallas import tpu as pltpu

# Module hyper-parameters (from __init__): deterministic, set in-script.
TIME_DROP_WIDTH = 4
TIME_STRIPES = 2
FREQ_DROP_WIDTH = 4
FREQ_STRIPES = 2
REPLACEMENT = "noise"  # 'noise' or 'random'


def _sample_fill(key, shape, dtype):
    """Random replacement values, matching the torch module's distributions."""
    if REPLACEMENT == "noise":
        n = jax.random.normal(key, shape, dtype=jnp.float32)
        # torch: clamp(randn*20 - 60, min=-80, max=0) / 255
        return (jnp.clip(n * 20.0 - 60.0, -80.0, 0.0) * (1.0 / 255.0)).astype(dtype)
    else:  # 'random' -> torch.rand_like, uniform [0, 1)
        return jax.random.uniform(key, shape, dtype=jnp.float32).astype(dtype)


def spec_aug_kernel(tparam_ref, fparam_ref, x_ref, tfill_ref, ffill_ref, o_ref):
    # tparam_ref: SMEM (B*TIME_STRIPES*2,)  int32  [bgn, len] per (b, stripe)
    # fparam_ref: SMEM (B*FREQ_STRIPES*3,)  int32  [win, off, len] per (b, stripe)
    # x_ref/o_ref: VMEM (1, C, H, W) block for batch element b
    # tfill_ref:  VMEM (1, TIME_STRIPES*C, H, TIME_DROP_WIDTH)  per-stripe columns
    # ffill_ref:  VMEM (1, FREQ_STRIPES*C, FREQ_DROP_WIDTH, W)  per-stripe row blocks
    b = pl.program_id(0)
    x = x_ref[...]                                   # (1, C, H, W), input dtype
    _, C, H, W = x.shape

    # ---- time dropper (stripes along W = lane dim), applied first -----------
    # Per-column masked selects; masks live on a narrow (1,1,1,W) iota and
    # broadcast inside the select (no full-slab index slabs materialized).
    w_idx = jax.lax.broadcasted_iota(jnp.int32, (1, 1, 1, W), 3)
    for s in range(TIME_STRIPES):
        base = b * (2 * TIME_STRIPES) + 2 * s
        bgn = tparam_ref[base]
        ln = tparam_ref[base + 1]
        for j in range(TIME_DROP_WIDTH):
            col = tfill_ref[0, s * C:(s + 1) * C, :, j:j + 1]     # (C, H, 1)
            # sentinel -1 disables the column when j >= stripe length
            target = jnp.where(j < ln, bgn + j, -1)
            x = jnp.where(w_idx == target, col[None], x)

    o_ref[...] = x

    # ---- freq dropper (stripes along H = sublane dim), applied second -------
    # Region read-modify-write of a FREQ_DROP_WIDTH-row window; runs after the
    # full-block store, so freq stripes overwrite overlapping time stripes
    # exactly as in the torch module.
    r_idx = jax.lax.broadcasted_iota(jnp.int32, (1, FREQ_DROP_WIDTH, 1), 1)
    for s in range(FREQ_STRIPES):
        base = b * (3 * FREQ_STRIPES) + 3 * s
        win = fparam_ref[base]        # window start (clamped so win + DW <= H)
        off = fparam_ref[base + 1]    # stripe offset inside the window
        ln = fparam_ref[base + 2]     # stripe length (0 => skip entirely)

        @pl.when(ln > 0)
        def _(s=s, win=win, off=off, ln=ln):
            cur = o_ref[0, :, pl.ds(win, FREQ_DROP_WIDTH), :]            # (C, DW, W)
            fill = ffill_ref[0, s * C:(s + 1) * C]                        # (C, DW, W)
            rep = (r_idx >= off) & (r_idx < off + ln)
            o_ref[0, :, pl.ds(win, FREQ_DROP_WIDTH), :] = jnp.where(rep, fill, cur)


def _round_up(n, m):
    return ((n + m - 1) // m) * m


def _vmem_limit_bytes(C, H, W, itemsize):
    """Scoped-VMEM request derived from padded block sizes (v7x-safe cap)."""
    x_blk = C * _round_up(H, 8) * _round_up(W, 128) * itemsize
    t_blk = TIME_STRIPES * C * _round_up(H, 8) * _round_up(TIME_DROP_WIDTH, 128) * itemsize
    f_blk = FREQ_STRIPES * C * _round_up(FREQ_DROP_WIDTH, 8) * _round_up(W, 128) * itemsize
    # double-buffered x-in + x-out, double-buffered fills, plus slack
    est = 4 * x_blk + 2 * (t_blk + f_blk) + (4 << 20)
    return int(min(max(est, 32 * 1024 * 1024), 64 * 1024 * 1024))


def random_replacement_spec_augmentation(x, key, training=True):
    """Forward pass of RandomReplacementSpecAugmentation. x: [B, C, H, W]."""
    if not training:
        return x  # eval mode: identity

    B, C, H, W = x.shape
    assert W >= TIME_DROP_WIDTH, "time axis must be at least time_drop_width wide"
    assert H >= FREQ_DROP_WIDTH, "freq axis must be at least freq_drop_width wide"

    k_tl, k_tb, k_fl, k_fb, k_tf, k_ff = jax.random.split(key, 6)

    # torch: distance = randint(0, drop_width); bgn = randint(0, total_width - distance)
    t_len = jax.random.randint(k_tl, (B, TIME_STRIPES), 0, TIME_DROP_WIDTH, dtype=jnp.int32)
    t_bgn = jax.random.randint(k_tb, (B, TIME_STRIPES), 0, W - t_len, dtype=jnp.int32)
    f_len = jax.random.randint(k_fl, (B, FREQ_STRIPES), 0, FREQ_DROP_WIDTH, dtype=jnp.int32)
    f_bgn = jax.random.randint(k_fb, (B, FREQ_STRIPES), 0, H - f_len, dtype=jnp.int32)

    # Time params, flat int32: [bgn, len] per (batch, stripe).
    tparams = jnp.stack([t_bgn, t_len], axis=-1).reshape(B * TIME_STRIPES * 2)

    # Freq params, flat int32: clamp the DW-wide window so it never leaves [0, H),
    # and express the stripe as [window_start, offset_in_window, len].
    f_win = jnp.minimum(f_bgn, H - FREQ_DROP_WIDTH)
    f_off = f_bgn - f_win
    fparams = jnp.stack([f_win, f_off, f_len], axis=-1).reshape(B * FREQ_STRIPES * 3)

    # Stripe-only random fills (tiny vs. the full slab), no degenerate trailing dims.
    # Time fill: per (stripe, channel) an (H, drop_width) column block.
    tfill = _sample_fill(k_tf, (B, TIME_STRIPES * C, H, TIME_DROP_WIDTH), x.dtype)
    # Freq fill: per (stripe, channel) a (drop_width, W) row block (region orientation).
    ffill = _sample_fill(k_ff, (B, FREQ_STRIPES * C, FREQ_DROP_WIDTH, W), x.dtype)

    grid_spec = pltpu.PrefetchScalarGridSpec(
        num_scalar_prefetch=2,
        grid=(B,),
        in_specs=[
            pl.BlockSpec((1, C, H, W), lambda b, *_: (b, 0, 0, 0)),
            pl.BlockSpec((1, TIME_STRIPES * C, H, TIME_DROP_WIDTH),
                         lambda b, *_: (b, 0, 0, 0)),
            pl.BlockSpec((1, FREQ_STRIPES * C, FREQ_DROP_WIDTH, W),
                         lambda b, *_: (b, 0, 0, 0)),
        ],
        out_specs=pl.BlockSpec((1, C, H, W), lambda b, *_: (b, 0, 0, 0)),
    )

    return pl.pallas_call(
        spec_aug_kernel,
        out_shape=jax.ShapeDtypeStruct(x.shape, x.dtype),
        grid_spec=grid_spec,
        compiler_params=pltpu.CompilerParams(
            dimension_semantics=("parallel",),   # independent batch slices (both v7x TCs when B >= 2)
            vmem_limit_bytes=_vmem_limit_bytes(C, H, W, jnp.dtype(x.dtype).itemsize),
        ),
    )(tparams, fparams, x, tfill, ffill)


if __name__ == "__main__":
    key = jax.random.PRNGKey(0)
    kx, kaug = jax.random.split(key)

    B, C, H, W = 2, 4, 16, 16
    x = jax.random.uniform(kx, (B, C, H, W), dtype=jnp.float32)

    y = random_replacement_spec_augmentation(x, kaug, training=True)
    y = jax.block_until_ready(y)

    assert y.shape == x.shape and y.dtype == x.dtype

    # Only stripe-covered elements may differ (len <= drop_width - 1 per stripe).
    changed = (y != x)
    max_changed = B * (TIME_STRIPES * (TIME_DROP_WIDTH - 1) * C * H
                       + FREQ_STRIPES * (FREQ_DROP_WIDTH - 1) * C * W)
    assert int(changed.sum()) <= max_changed
    if REPLACEMENT == "noise":
        # Replaced values lie in [-80/255, 0].
        assert float(jnp.max(jnp.where(changed, y, -1.0))) <= 1e-6

    # eval mode is identity
    y_eval = random_replacement_spec_augmentation(x, kaug, training=False)
    assert jnp.array_equal(jax.block_until_ready(y_eval), x)

    print("KERNEL_OK")
</pallas_src>

<mosaic_0001>
module attributes {stable_mosaic.version = 11 : i64} {
  func.func @spec_aug_kernel(%arg0: i32, %arg1: memref<8xi32, #tpu.memory_space<smem>>, %arg2: memref<12xi32, #tpu.memory_space<smem>>, %arg3: memref<1x4x16x16xf32, #tpu.memory_space<vmem>>, %arg4: memref<1x8x16x4xf32, #tpu.memory_space<vmem>>, %arg5: memref<1x8x4x16xf32, #tpu.memory_space<vmem>>, %arg6: memref<1x4x16x16xf32, #tpu.memory_space<vmem>>) attributes {dimension_semantics = [#tpu.dimension_semantics<parallel>], iteration_bounds = array<i64: 2>, scalar_prefetch = 2 : i64, scratch_operands = 0 : i64, tpu.core_type = #tpu.core_type<tc>, window_params = [{transform_indices = @transform_0, window_bounds = array<i64: 1, 4, 16, 16>}, {transform_indices = @transform_1, window_bounds = array<i64: 1, 8, 16, 4>}, {transform_indices = @transform_2, window_bounds = array<i64: 1, 8, 4, 16>}, {transform_indices = @transform_3, window_bounds = array<i64: 1, 4, 16, 16>}]} {
    %c0 = arith.constant 0 : index
    %c0_0 = arith.constant 0 : index
    %c0_1 = arith.constant 0 : index
    %c0_2 = arith.constant 0 : index
    %0 = vector.load %arg3[%c0, %c0_0, %c0_1, %c0_2] : memref<1x4x16x16xf32, #tpu.memory_space<vmem>>, vector<1x4x16x16xf32>
    %1 = tpu.iota {dimensions = array<i32: 3>} : vector<1x1x1x16xi32>
    %c4_i32 = arith.constant 4 : i32
    %2 = arith.muli %arg0, %c4_i32 : i32
    %c0_i32 = arith.constant 0 : i32
    %3 = arith.addi %2, %c0_i32 : i32
    %4 = arith.index_cast %3 : i32 to index
    %5 = memref.load %arg1[%4] : memref<8xi32, #tpu.memory_space<smem>>
    %c1_i32 = arith.constant 1 : i32
    %6 = arith.addi %3, %c1_i32 : i32
    %7 = arith.index_cast %6 : i32 to index
    %8 = memref.load %arg1[%7] : memref<8xi32, #tpu.memory_space<smem>>
    %c0_3 = arith.constant 0 : index
    %c0_4 = arith.constant 0 : index
    %c0_5 = arith.constant 0 : index
    %c0_6 = arith.constant 0 : index
    %9 = vector.load %arg4[%c0_3, %c0_4, %c0_5, %c0_6] : memref<1x8x16x4xf32, #tpu.memory_space<vmem>>, vector<1x4x16x1xf32>
    %10 = vector.shape_cast %9 : vector<1x4x16x1xf32> to vector<4x16x1xf32>
    %c0_i32_7 = arith.constant 0 : i32
    %11 = arith.cmpi sgt, %8, %c0_i32_7 : i32
    %c0_i32_8 = arith.constant 0 : i32
    %12 = arith.addi %5, %c0_i32_8 : i32
    %c-1_i32 = arith.constant -1 : i32
    %13 = arith.select %11, %12, %c-1_i32 : i32
    %14 = vector.broadcast %13 : i32 to vector<1x1x1x16xi32>
    %15 = arith.cmpi eq, %1, %14 : vector<1x1x1x16xi32>
    %16 = vector.shape_cast %10 : vector<4x16x1xf32> to vector<1x4x16x1xf32>
    %17 = vector.shape_cast %15 : vector<1x1x1x16xi1> to vector<1x1x1x16xi1>
    %18 = vector.broadcast %17 : vector<1x1x1x16xi1> to vector<1x4x16x16xi1>
    %19 = vector.shape_cast %16 : vector<1x4x16x1xf32> to vector<1x4x16x1xf32>
    %20 = vector.broadcast %19 : vector<1x4x16x1xf32> to vector<1x4x16x16xf32>
    %21 = arith.select %18, %20, %0 : vector<1x4x16x16xi1>, vector<1x4x16x16xf32>
    %c0_9 = arith.constant 0 : index
    %c0_10 = arith.constant 0 : index
    %c0_11 = arith.constant 0 : index
    %c1 = arith.constant 1 : index
    %22 = vector.load %arg4[%c0_9, %c0_10, %c0_11, %c1] : memref<1x8x16x4xf32, #tpu.memory_space<vmem>>, vector<1x4x16x1xf32>
    %23 = vector.shape_cast %22 : vector<1x4x16x1xf32> to vector<4x16x1xf32>
    %c1_i32_12 = arith.constant 1 : i32
    %24 = arith.cmpi sgt, %8, %c1_i32_12 : i32
    %c1_i32_13 = arith.constant 1 : i32
    %25 = arith.addi %5, %c1_i32_13 : i32
    %c-1_i32_14 = arith.constant -1 : i32
    %26 = arith.select %24, %25, %c-1_i32_14 : i32
    %27 = vector.broadcast %26 : i32 to vector<1x1x1x16xi32>
    %28 = arith.cmpi eq, %1, %27 : vector<1x1x1x16xi32>
    %29 = vector.shape_cast %23 : vector<4x16x1xf32> to vector<1x4x16x1xf32>
    %30 = vector.shape_cast %28 : vector<1x1x1x16xi1> to vector<1x1x1x16xi1>
    %31 = vector.broadcast %30 : vector<1x1x1x16xi1> to vector<1x4x16x16xi1>
    %32 = vector.shape_cast %29 : vector<1x4x16x1xf32> to vector<1x4x16x1xf32>
    %33 = vector.broadcast %32 : vector<1x4x16x1xf32> to vector<1x4x16x16xf32>
    %34 = arith.select %31, %33, %21 : vector<1x4x16x16xi1>, vector<1x4x16x16xf32>
    %c0_15 = arith.constant 0 : index
    %c0_16 = arith.constant 0 : index
    %c0_17 = arith.constant 0 : index
    %c2 = arith.constant 2 : index
    %35 = vector.load %arg4[%c0_15, %c0_16, %c0_17, %c2] : memref<1x8x16x4xf32, #tpu.memory_space<vmem>>, vector<1x4x16x1xf32>
    %36 = vector.shape_cast %35 : vector<1x4x16x1xf32> to vector<4x16x1xf32>
    %c2_i32 = arith.constant 2 : i32
    %37 = arith.cmpi sgt, %8, %c2_i32 : i32
    %c2_i32_18 = arith.constant 2 : i32
    %38 = arith.addi %5, %c2_i32_18 : i32
    %c-1_i32_19 = arith.constant -1 : i32
    %39 = arith.select %37, %38, %c-1_i32_19 : i32
    %40 = vector.broadcast %39 : i32 to vector<1x1x1x16xi32>
    %41 = arith.cmpi eq, %1, %40 : vector<1x1x1x16xi32>
    %42 = vector.shape_cast %36 : vector<4x16x1xf32> to vector<1x4x16x1xf32>
    %43 = vector.shape_cast %41 : vector<1x1x1x16xi1> to vector<1x1x1x16xi1>
    %44 = vector.broadcast %43 : vector<1x1x1x16xi1> to vector<1x4x16x16xi1>
    %45 = vector.shape_cast %42 : vector<1x4x16x1xf32> to vector<1x4x16x1xf32>
    %46 = vector.broadcast %45 : vector<1x4x16x1xf32> to vector<1x4x16x16xf32>
    %47 = arith.select %44, %46, %34 : vector<1x4x16x16xi1>, vector<1x4x16x16xf32>
    %c0_20 = arith.constant 0 : index
    %c0_21 = arith.constant 0 : index
    %c0_22 = arith.constant 0 : index
    %c3 = arith.constant 3 : index
    %48 = vector.load %arg4[%c0_20, %c0_21, %c0_22, %c3] : memref<1x8x16x4xf32, #tpu.memory_space<vmem>>, vector<1x4x16x1xf32>
    %49 = vector.shape_cast %48 : vector<1x4x16x1xf32> to vector<4x16x1xf32>
    %c3_i32 = arith.constant 3 : i32
    %50 = arith.cmpi sgt, %8, %c3_i32 : i32
    %c3_i32_23 = arith.constant 3 : i32
    %51 = arith.addi %5, %c3_i32_23 : i32
    %c-1_i32_24 = arith.constant -1 : i32
    %52 = arith.select %50, %51, %c-1_i32_24 : i32
    %53 = vector.broadcast %52 : i32 to vector<1x1x1x16xi32>
    %54 = arith.cmpi eq, %1, %53 : vector<1x1x1x16xi32>
    %55 = vector.shape_cast %49 : vector<4x16x1xf32> to vector<1x4x16x1xf32>
    %56 = vector.shape_cast %54 : vector<1x1x1x16xi1> to vector<1x1x1x16xi1>
    %57 = vector.broadcast %56 : vector<1x1x1x16xi1> to vector<1x4x16x16xi1>
    %58 = vector.shape_cast %55 : vector<1x4x16x1xf32> to vector<1x4x16x1xf32>
    %59 = vector.broadcast %58 : vector<1x4x16x1xf32> to vector<1x4x16x16xf32>
    %60 = arith.select %57, %59, %47 : vector<1x4x16x16xi1>, vector<1x4x16x16xf32>
    %c4_i32_25 = arith.constant 4 : i32
    %61 = arith.muli %arg0, %c4_i32_25 : i32
    %c2_i32_26 = arith.constant 2 : i32
    %62 = arith.addi %61, %c2_i32_26 : i32
    %63 = arith.index_cast %62 : i32 to index
    %64 = memref.load %arg1[%63] : memref<8xi32, #tpu.memory_space<smem>>
    %c1_i32_27 = arith.constant 1 : i32
    %65 = arith.addi %62, %c1_i32_27 : i32
    %66 = arith.index_cast %65 : i32 to index
    %67 = memref.load %arg1[%66] : memref<8xi32, #tpu.memory_space<smem>>
    %c0_28 = arith.constant 0 : index
    %c4 = arith.constant 4 : index
    %c0_29 = arith.constant 0 : index
    %c0_30 = arith.constant 0 : index
    %68 = vector.load %arg4[%c0_28, %c4, %c0_29, %c0_30] : memref<1x8x16x4xf32, #tpu.memory_space<vmem>>, vector<1x4x16x1xf32>
    %69 = vector.shape_cast %68 : vector<1x4x16x1xf32> to vector<4x16x1xf32>
    %c0_i32_31 = arith.constant 0 : i32
    %70 = arith.cmpi sgt, %67, %c0_i32_31 : i32
    %c0_i32_32 = arith.constant 0 : i32
    %71 = arith.addi %64, %c0_i32_32 : i32
    %c-1_i32_33 = arith.constant -1 : i32
    %72 = arith.select %70, %71, %c-1_i32_33 : i32
    %73 = vector.broadcast %72 : i32 to vector<1x1x1x16xi32>
    %74 = arith.cmpi eq, %1, %73 : vector<1x1x1x16xi32>
    %75 = vector.shape_cast %69 : vector<4x16x1xf32> to vector<1x4x16x1xf32>
    %76 = vector.shape_cast %74 : vector<1x1x1x16xi1> to vector<1x1x1x16xi1>
    %77 = vector.broadcast %76 : vector<1x1x1x16xi1> to vector<1x4x16x16xi1>
    %78 = vector.shape_cast %75 : vector<1x4x16x1xf32> to vector<1x4x16x1xf32>
    %79 = vector.broadcast %78 : vector<1x4x16x1xf32> to vector<1x4x16x16xf32>
    %80 = arith.select %77, %79, %60 : vector<1x4x16x16xi1>, vector<1x4x16x16xf32>
    %c0_34 = arith.constant 0 : index
    %c4_35 = arith.constant 4 : index
    %c0_36 = arith.constant 0 : index
    %c1_37 = arith.constant 1 : index
    %81 = vector.load %arg4[%c0_34, %c4_35, %c0_36, %c1_37] : memref<1x8x16x4xf32, #tpu.memory_space<vmem>>, vector<1x4x16x1xf32>
    %82 = vector.shape_cast %81 : vector<1x4x16x1xf32> to vector<4x16x1xf32>
    %c1_i32_38 = arith.constant 1 : i32
    %83 = arith.cmpi sgt, %67, %c1_i32_38 : i32
    %c1_i32_39 = arith.constant 1 : i32
    %84 = arith.addi %64, %c1_i32_39 : i32
    %c-1_i32_40 = arith.constant -1 : i32
    %85 = arith.select %83, %84, %c-1_i32_40 : i32
    %86 = vector.broadcast %85 : i32 to vector<1x1x1x16xi32>
    %87 = arith.cmpi eq, %1, %86 : vector<1x1x1x16xi32>
    %88 = vector.shape_cast %82 : vector<4x16x1xf32> to vector<1x4x16x1xf32>
    %89 = vector.shape_cast %87 : vector<1x1x1x16xi1> to vector<1x1x1x16xi1>
    %90 = vector.broadcast %89 : vector<1x1x1x16xi1> to vector<1x4x16x16xi1>
    %91 = vector.shape_cast %88 : vector<1x4x16x1xf32> to vector<1x4x16x1xf32>
    %92 = vector.broadcast %91 : vector<1x4x16x1xf32> to vector<1x4x16x16xf32>
    %93 = arith.select %90, %92, %80 : vector<1x4x16x16xi1>, vector<1x4x16x16xf32>
    %c0_41 = arith.constant 0 : index
    %c4_42 = arith.constant 4 : index
    %c0_43 = arith.constant 0 : index
    %c2_44 = arith.constant 2 : index
    %94 = vector.load %arg4[%c0_41, %c4_42, %c0_43, %c2_44] : memref<1x8x16x4xf32, #tpu.memory_space<vmem>>, vector<1x4x16x1xf32>
    %95 = vector.shape_cast %94 : vector<1x4x16x1xf32> to vector<4x16x1xf32>
    %c2_i32_45 = arith.constant 2 : i32
    %96 = arith.cmpi sgt, %67, %c2_i32_45 : i32
    %c2_i32_46 = arith.constant 2 : i32
    %97 = arith.addi %64, %c2_i32_46 : i32
    %c-1_i32_47 = arith.constant -1 : i32
    %98 = arith.select %96, %97, %c-1_i32_47 : i32
    %99 = vector.broadcast %98 : i32 to vector<1x1x1x16xi32>
    %100 = arith.cmpi eq, %1, %99 : vector<1x1x1x16xi32>
    %101 = vector.shape_cast %95 : vector<4x16x1xf32> to vector<1x4x16x1xf32>
    %102 = vector.shape_cast %100 : vector<1x1x1x16xi1> to vector<1x1x1x16xi1>
    %103 = vector.broadcast %102 : vector<1x1x1x16xi1> to vector<1x4x16x16xi1>
    %104 = vector.shape_cast %101 : vector<1x4x16x1xf32> to vector<1x4x16x1xf32>
    %105 = vector.broadcast %104 : vector<1x4x16x1xf32> to vector<1x4x16x16xf32>
    %106 = arith.select %103, %105, %93 : vector<1x4x16x16xi1>, vector<1x4x16x16xf32>
    %c0_48 = arith.constant 0 : index
    %c4_49 = arith.constant 4 : index
    %c0_50 = arith.constant 0 : index
    %c3_51 = arith.constant 3 : index
    %107 = vector.load %arg4[%c0_48, %c4_49, %c0_50, %c3_51] : memref<1x8x16x4xf32, #tpu.memory_space<vmem>>, vector<1x4x16x1xf32>
    %108 = vector.shape_cast %107 : vector<1x4x16x1xf32> to vector<4x16x1xf32>
    %c3_i32_52 = arith.constant 3 : i32
    %109 = arith.cmpi sgt, %67, %c3_i32_52 : i32
    %c3_i32_53 = arith.constant 3 : i32
    %110 = arith.addi %64, %c3_i32_53 : i32
    %c-1_i32_54 = arith.constant -1 : i32
    %111 = arith.select %109, %110, %c-1_i32_54 : i32
    %112 = vector.broadcast %111 : i32 to vector<1x1x1x16xi32>
    %113 = arith.cmpi eq, %1, %112 : vector<1x1x1x16xi32>
    %114 = vector.shape_cast %108 : vector<4x16x1xf32> to vector<1x4x16x1xf32>
    %115 = vector.shape_cast %113 : vector<1x1x1x16xi1> to vector<1x1x1x16xi1>
    %116 = vector.broadcast %115 : vector<1x1x1x16xi1> to vector<1x4x16x16xi1>
    %117 = vector.shape_cast %114 : vector<1x4x16x1xf32> to vector<1x4x16x1xf32>
    %118 = vector.broadcast %117 : vector<1x4x16x1xf32> to vector<1x4x16x16xf32>
    %119 = arith.select %116, %118, %106 : vector<1x4x16x16xi1>, vector<1x4x16x16xf32>
    %c0_55 = arith.constant 0 : index
    %c0_56 = arith.constant 0 : index
    %c0_57 = arith.constant 0 : index
    %c0_58 = arith.constant 0 : index
    %120 = vector.load %arg6[%c0_55, %c0_56, %c0_57, %c0_58] : memref<1x4x16x16xf32, #tpu.memory_space<vmem>>, vector<1x4x16x16xf32>
    tpu.vector_store %arg6[%c0_55, %c0_56, %c0_57, %c0_58], %119 {strides = array<i32>} : memref<1x4x16x16xf32, #tpu.memory_space<vmem>>, vector<1x4x16x16xf32>,
    %121 = tpu.iota {dimensions = array<i32: 1>} : vector<1x4x1xi32>
    %c6_i32 = arith.constant 6 : i32
    %122 = arith.muli %arg0, %c6_i32 : i32
    %c0_i32_59 = arith.constant 0 : i32
    %123 = arith.addi %122, %c0_i32_59 : i32
    %124 = arith.index_cast %123 : i32 to index
    %125 = memref.load %arg2[%124] : memref<12xi32, #tpu.memory_space<smem>>
    %c1_i32_60 = arith.constant 1 : i32
    %126 = arith.addi %123, %c1_i32_60 : i32
    %127 = arith.index_cast %126 : i32 to index
    %128 = memref.load %arg2[%127] : memref<12xi32, #tpu.memory_space<smem>>
    %c2_i32_61 = arith.constant 2 : i32
    %129 = arith.addi %123, %c2_i32_61 : i32
    %130 = arith.index_cast %129 : i32 to index
    %131 = memref.load %arg2[%130] : memref<12xi32, #tpu.memory_space<smem>>
    %c0_i32_62 = arith.constant 0 : i32
    %132 = arith.cmpi sgt, %131, %c0_i32_62 : i32
    %133 = arith.extui %132 : i1 to i32
    %c0_i32_63 = arith.constant 0 : i32
    %134 = arith.cmpi ne, %133, %c0_i32_63 : i32
    scf.if %134 {
      %c0_70 = arith.constant 0 : index
      %c0_71 = arith.constant 0 : index
      %148 = arith.index_cast %125 : i32 to index
      %c0_72 = arith.constant 0 : index
      %149 = vector.load %arg6[%c0_70, %c0_71, %148, %c0_72] : memref<1x4x16x16xf32, #tpu.memory_space<vmem>>, vector<1x4x4x16xf32>
      %150 = vector.shape_cast %149 : vector<1x4x4x16xf32> to vector<4x4x16xf32>
      %c0_73 = arith.constant 0 : index
      %c0_74 = arith.constant 0 : index
      %c0_75 = arith.constant 0 : index
      %c0_76 = arith.constant 0 : index
      %151 = vector.load %arg5[%c0_73, %c0_74, %c0_75, %c0_76] : memref<1x8x4x16xf32, #tpu.memory_space<vmem>>, vector<1x4x4x16xf32>
      %152 = vector.shape_cast %151 : vector<1x4x4x16xf32> to vector<4x4x16xf32>
      %153 = vector.broadcast %128 : i32 to vector<1x4x1xi32>
      %154 = arith.cmpi sge, %121, %153 : vector<1x4x1xi32>
      %155 = arith.addi %128, %131 : i32
      %156 = vector.broadcast %155 : i32 to vector<1x4x1xi32>
      %157 = arith.cmpi slt, %121, %156 : vector<1x4x1xi32>
      %158 = arith.andi %154, %157 : vector<1x4x1xi1>
      %159 = vector.shape_cast %158 : vector<1x4x1xi1> to vector<1x4x1xi1>
      %160 = vector.broadcast %159 : vector<1x4x1xi1> to vector<4x4x16xi1>
      %161 = arith.select %160, %152, %150 : vector<4x4x16xi1>, vector<4x4x16xf32>
      %c0_77 = arith.constant 0 : index
      %c0_78 = arith.constant 0 : index
      %162 = arith.index_cast %125 : i32 to index
      %c0_79 = arith.constant 0 : index
      %163 = vector.load %arg6[%c0_77, %c0_78, %162, %c0_79] : memref<1x4x16x16xf32, #tpu.memory_space<vmem>>, vector<1x4x4x16xf32>
      %164 = vector.shape_cast %163 : vector<1x4x4x16xf32> to vector<4x4x16xf32>
      %165 = vector.shape_cast %161 : vector<4x4x16xf32> to vector<1x4x4x16xf32>
      tpu.vector_store %arg6[%c0_77, %c0_78, %162, %c0_79], %165 {strides = array<i32>} : memref<1x4x16x16xf32, #tpu.memory_space<vmem>>, vector<1x4x4x16xf32>,
    } else {
    }
    %c6_i32_64 = arith.constant 6 : i32
    %135 = arith.muli %arg0, %c6_i32_64 : i32
    %c3_i32_65 = arith.constant 3 : i32
    %136 = arith.addi %135, %c3_i32_65 : i32
    %137 = arith.index_cast %136 : i32 to index
    %138 = memref.load %arg2[%137] : memref<12xi32, #tpu.memory_space<smem>>
    %c1_i32_66 = arith.constant 1 : i32
    %139 = arith.addi %136, %c1_i32_66 : i32
    %140 = arith.index_cast %139 : i32 to index
    %141 = memref.load %arg2[%140] : memref<12xi32, #tpu.memory_space<smem>>
    %c2_i32_67 = arith.constant 2 : i32
    %142 = arith.addi %136, %c2_i32_67 : i32
    %143 = arith.index_cast %142 : i32 to index
    %144 = memref.load %arg2[%143] : memref<12xi32, #tpu.memory_space<smem>>
    %c0_i32_68 = arith.constant 0 : i32
    %145 = arith.cmpi sgt, %144, %c0_i32_68 : i32
    %146 = arith.extui %145 : i1 to i32
    %c0_i32_69 = arith.constant 0 : i32
    %147 = arith.cmpi ne, %146, %c0_i32_69 : i32
    scf.if %147 {
      %c0_70 = arith.constant 0 : index
      %c0_71 = arith.constant 0 : index
      %148 = arith.index_cast %138 : i32 to index
      %c0_72 = arith.constant 0 : index
      %149 = vector.load %arg6[%c0_70, %c0_71, %148, %c0_72] : memref<1x4x16x16xf32, #tpu.memory_space<vmem>>, vector<1x4x4x16xf32>
      %150 = vector.shape_cast %149 : vector<1x4x4x16xf32> to vector<4x4x16xf32>
      %c0_73 = arith.constant 0 : index
      %c4_74 = arith.constant 4 : index
      %c0_75 = arith.constant 0 : index
      %c0_76 = arith.constant 0 : index
      %151 = vector.load %arg5[%c0_73, %c4_74, %c0_75, %c0_76] : memref<1x8x4x16xf32, #tpu.memory_space<vmem>>, vector<1x4x4x16xf32>
      %152 = vector.shape_cast %151 : vector<1x4x4x16xf32> to vector<4x4x16xf32>
      %153 = vector.broadcast %141 : i32 to vector<1x4x1xi32>
      %154 = arith.cmpi sge, %121, %153 : vector<1x4x1xi32>
      %155 = arith.addi %141, %144 : i32
      %156 = vector.broadcast %155 : i32 to vector<1x4x1xi32>
      %157 = arith.cmpi slt, %121, %156 : vector<1x4x1xi32>
      %158 = arith.andi %154, %157 : vector<1x4x1xi1>
      %159 = vector.shape_cast %158 : vector<1x4x1xi1> to vector<1x4x1xi1>
      %160 = vector.broadcast %159 : vector<1x4x1xi1> to vector<4x4x16xi1>
      %161 = arith.select %160, %152, %150 : vector<4x4x16xi1>, vector<4x4x16xf32>
      %c0_77 = arith.constant 0 : index
      %c0_78 = arith.constant 0 : index
      %162 = arith.index_cast %138 : i32 to index
      %c0_79 = arith.constant 0 : index
      %163 = vector.load %arg6[%c0_77, %c0_78, %162, %c0_79] : memref<1x4x16x16xf32, #tpu.memory_space<vmem>>, vector<1x4x4x16xf32>
      %164 = vector.shape_cast %163 : vector<1x4x4x16xf32> to vector<4x4x16xf32>
      %165 = vector.shape_cast %161 : vector<4x4x16xf32> to vector<1x4x4x16xf32>
      tpu.vector_store %arg6[%c0_77, %c0_78, %162, %c0_79], %165 {strides = array<i32>} : memref<1x4x16x16xf32, #tpu.memory_space<vmem>>, vector<1x4x4x16xf32>,
    } else {
    }
    return
  }
  func.func @transform_0(%arg0: i32, %arg1: memref<8xi32, #tpu.memory_space<smem>>, %arg2: memref<12xi32, #tpu.memory_space<smem>>) -> (i32, i32, i32, i32) {
    %c0_i32 = arith.constant 0 : i32
    %c0_i32_0 = arith.constant 0 : i32
    %c0_i32_1 = arith.constant 0 : i32
    %c0_i32_2 = arith.constant 0 : i32
    return %arg0, %c0_i32, %c0_i32_0, %c0_i32_1 : i32, i32, i32, i32
  }
  func.func @transform_1(%arg0: i32, %arg1: memref<8xi32, #tpu.memory_space<smem>>, %arg2: memref<12xi32, #tpu.memory_space<smem>>) -> (i32, i32, i32, i32) {
    %c0_i32 = arith.constant 0 : i32
    %c0_i32_0 = arith.constant 0 : i32
    %c0_i32_1 = arith.constant 0 : i32
    %c0_i32_2 = arith.constant 0 : i32
    return %arg0, %c0_i32, %c0_i32_0, %c0_i32_1 : i32, i32, i32, i32
  }
  func.func @transform_2(%arg0: i32, %arg1: memref<8xi32, #tpu.memory_space<smem>>, %arg2: memref<12xi32, #tpu.memory_space<smem>>) -> (i32, i32, i32, i32) {
    %c0_i32 = arith.constant 0 : i32
    %c0_i32_0 = arith.constant 0 : i32
    %c0_i32_1 = arith.constant 0 : i32
    %c0_i32_2 = arith.constant 0 : i32
    return %arg0, %c0_i32, %c0_i32_0, %c0_i32_1 : i32, i32, i32, i32
  }
  func.func @transform_3(%arg0: i32, %arg1: memref<8xi32, #tpu.memory_space<smem>>, %arg2: memref<12xi32, #tpu.memory_space<smem>>) -> (i32, i32, i32, i32) {
    %c0_i32 = arith.constant 0 : i32
    %c0_i32_0 = arith.constant 0 : i32
    %c0_i32_1 = arith.constant 0 : i32
    %c0_i32_2 = arith.constant 0 : i32
    return %arg0, %c0_i32, %c0_i32_0, %c0_i32_1 : i32, i32, i32, i32
  }
}

</mosaic_0001>

<bundles_post_ra>
// kernel: tpu_custom_call.1
= control target key start
LH: loop header
LB: loop body
LE: loop exit
PB: predicated region body
PF: predicated region fallthrough
CT: control target
= control target key end

     0   :  { %s1618_s0 = inlined_call_operand.vmem [shape: s32[8], index: 0, kind: input, shape index: {}]   ;;  %s1619_s2 = inlined_call_operand.vmem [shape: f32[2,4,16,16], index: 2, kind: input, shape index: {}]   ;;  %s1620_s3 = inlined_call_operand.vmem [shape: f32[2,8,16,4], index: 3, kind: input, shape index: {}]   ;;  %s1621_s4 = inlined_call_operand.vmem [shape: f32[2,8,4,16], index: 4, kind: input, shape index: {}]   ;;  %s1622_s5 = inlined_call_operand.hbm [shape: f32[2,4,16,16], index: 5, kind: output, shape index: {}]   ;;  %s1623_s1 = inlined_call_operand.vmem [shape: s32[12], index: 1, kind: input, shape index: {}]  }
   0x1   :  { %s10_s20 = sshll.u32 %s1618_s0, 4  ;;  %s14_s23 = sshll.u32 %s1623_s1, 4  ;;  %s11_s20 = int_to_ptr.vmem [resolvable:$true] %s10_s20  ;;  %s15_s23 = int_to_ptr.vmem [resolvable:$true] %s14_s23 }
   0x2   :  { %s926_s24 = scalar_lea.vmem %s11_s20, 16  ;;  %p931_p1 = scmp.lt.s32.totalorder %s11_s20, %s11_s20 }
   0x3   :  { %p927_p0 = scmp.ne.s32.totalorder %s11_s20, %s926_s24  ;;  %p932_p2 = scmp.lt.s32.totalorder %s926_s24, %s926_s24 }
   0x5   :  { %p933_p3 = por %p932_p2, %p931_p1 }
   0x7   :  { %p934_p4 = pnand %p933_p3, %p927_p0 }
   0x9   :  { %937 = shalt.err (!%p934_p4)  }
   0xa   :  { %s1014_s25 = smov [#allocation3]   ;;  %s938_s26 = scalar_lea.vmem %s15_s23, 16 }
   0xb   :  { %13 = dma.vmem_to_smem %s11_s20, 16, %s1014_s25, [#allocation2] }
   0xc   :  { %p939_p5 = scmp.ne.s32.totalorder %s15_s23, %s938_s26  ;;  %p943_p6 = scmp.lt.s32.totalorder %s15_s23, %s15_s23 }
   0xd   :  { %p944_p7 = scmp.lt.s32.totalorder %s938_s26, %s938_s26 }
   0xf   :  { %p945_p8 = por %p944_p7, %p943_p6 }
  0x11   :  { %p946_p9 = pnand %p945_p8, %p939_p5 }
  0x13   :  { %949 = shalt.err (!%p946_p9)  }
  0x14   :  { %s1015_s0 = smov [#allocation4]  }
  0x15   :  { %17 = dma.vmem_to_smem %s15_s23, 16, %s1015_s0, [#allocation2] }
  0x16   :  { %992 = dma.done.wait [#allocation2], 32 }
  0x17   :  { %993 = vsyncadd [#allocation2], 4294967264 }
  0x18   :  { %19 = sfence }
  0x19   :  { %20 = vsyncpa [#allocation6], 0 }
  0x1a   :  { %22 = vsyncpa [#allocation6 + $0x1], 0  ;;  %s1059_s1 = smov 0   ;;  %s1061_s27 = smov 0  }
  0x1b   :  { %s1063_s28 = smov 0   ;;  %s1065_s29 = smov 0  }
  0x1c LB: > { %s1080_s30 = sadd.s32 4294967295, %s1012_s29   ;;  %s832_s6 = sadd.s32 4294967294, %s1012_s29   ;;  %s1012_s29 = sphi %s1065_s29, %s1645_s29   ;;  %s1008_s28 = sphi %s1063_s28, %s1644_s28   ;;  %s1004_s27 = sphi %s1061_s27, %s1643_s27   ;;  %s1000_s1 = sphi %s1059_s1, %s1642_s1  }
  0x1d   : > { %s1084_s7 = sadd.s32 1, %s1012_s29   ;;  %s113_s8 = sadd.s32 1, %s1008_s28 }
  0x1e   : > { %s110_s9 = ssub.s32 %s1012_s29, %s1084_s7  ;;  %p123_p10 = scmp.ne.s32.totalorder %s1008_s28, %s1004_s27 }
  0x1f   : > { %p111_p11 = scmp.eq.s32.totalorder %s110_s9, 0  ;;  %p124_p12 = scmp.eq.s32.totalorder %s1080_s30, 1 }
  0x20   : > { %p129_p13 = scmp.ne.s32.totalorder %s1004_s27, %s1000_s1  ;;  %p130_p0 = scmp.eq.s32.totalorder %s832_s6, 1 }
  0x21   : > { %s1095_s10 = scalar_select %p111_p11, %s1008_s28, %s113_s8  }
  0x22   : > { %p1097_p1 = por %p124_p12, %p123_p10  ;;  %p1101_p2 = por %p130_p0, %p129_p13 }
  0x23   : > { %p835_p3 = scmp.ge.s32.totalorder %s1012_s29, 1  ;;  %p172_p4 = scmp.lt.s32.totalorder %s1012_s29, 3 }
  0x25   : > { %p173_p5 = pnand %p835_p3, %p172_p4 }
  0x26   : > { %p206_p6 = scmp.lt.s32.totalorder (!%p173_p5), %s1080_s30, 1  ;;  %s1184_s22 = sshll.u32 (!%p173_p5), %s1080_s30, 2 }
  0x27   : > { %176 = sbr.rel (%p173_p5) target bundleno = 375 (0x177), region = 32  ;;  %s233_s23 = sadd.s32 (!%p173_p5), 1, %s1184_s22 }
  0x28   : > { %s1190_s24 = sld [smem:[#allocation3 + %s233_s23]] (!%p173_p5)  ;;  %s440_s23 = sadd.s32 (!%p173_p5), 3, %s1184_s22 }
  0x29   : > { %s1194_s25 = sld [smem:[#allocation3 + %s1184_s22]] (!%p173_p5) }
  0x2c   : > { %v1016_v0 = vmov 0   ;;  %s1111_s13 = scalar_select %p206_p6, %s1080_s30, 1  ;;  %v1017_v10 = vmov 1   ;;  %v1018_v13 = vmov 2   ;;  %v1019_v17 = vmov 3  }
  0x2d   : > { %915 = vset.pattern.permute.xlu1 %v1016_v0  ;;  %914 = vset.pattern.permute.xlu0 %v1016_v0  ;;  %v229_v20 = vlaneseq  ;;  %vm646_vm8 = vcmask 130048  }
  0x2e   : > { %s864_s14 = sshll.u32 %s1111_s13, 7  ;;  %s865_s15 = sshll.u32 %s1111_s13, 5 }
  0x2f   : > { %s1118_s18 = scalar_lea.vmem %s1620_s3, %s864_s14  ;;  %s1123_s21 = scalar_lea.vmem %s1621_s4, %s865_s15  ;;  %v1200_v21 = vand.u32 127, %v229_v20  ;;  %v1214_v30 = vshrl.u32 %v229_v20, 7 }
  0x30   : > { %v237_v1 = vld [vmem:[%s1118_s18 + $0x10] sm:$0xff]  ;;  %v1127_v2 = vld [vmem:[%s1118_s18] sm:$0xff]  ;;  %v1131_v3 = vld [vmem:[%s1118_s18 + $0x18] sm:$0xff]  ;;  %p243_p7 = scmp.gt.s32.totalorder %s1190_s24, 0  ;;  %s863_s0 = sshll.u32 %s1111_s13, 6 }
  0x31   : > { %261 = vperm.xlu1 %915, %v237_v1   ;;  %251 = vperm.xlu0 %914, %v1127_v2   ;;  %v236_v4 = vld [vmem:[%s1118_s18 + $0x8] sm:$0xff]  ;;  %v239_v6 = vld [vmem:[%s1118_s18 + $0x20] sm:$0xff]  ;;  %v1141_v7 = vld [vmem:[%s1118_s18 + $0x38] sm:$0xff]  ;;  %s210_s9 = scalar_lea.vmem %s1619_s2, %s863_s0  ;;  %p297_p8 = scmp.gt.s32.totalorder %s1190_s24, 1 }
  0x32   : > { %v1136_v5 = vld [vmem:[%s1118_s18 + $0x28] sm:$0xff]  ;;  %v241_v8 = vld [vmem:[%s1118_s18 + $0x30] sm:$0xff]  ;;  %v1150_v11 = vld [vmem:[%s1118_s18 + $0x60] sm:$0xff]  ;;  %s244_s26 = scalar_select %p243_p7, %s1194_s25, 4294967295 }
  0x33   : > { %v1146_v9 = vld [vmem:[%s1118_s18 + $0x48] sm:$0xff]  ;;  %v1154_v12 = vld [vmem:[%s1118_s18 + $0x70] sm:$0xff]  ;;  %v844_v14 = vld [vmem:[%s1118_s18 + $0x40] sm:$0xff]  ;;  %s298_s13 = sadd.s32 1, %s1194_s25  ;;  %s1234_s14 = smul.u32 6, %s1080_s30 }
  0x34   : > { %v847_v15 = vld [vmem:[%s1118_s18 + $0x58] sm:$0xff]  ;;  %v849_v16 = vld [vmem:[%s1118_s18 + $0x68] sm:$0xff]  ;;  %v1172_v19 = vld [vmem:[%s1118_s18 + $0x50] sm:$0xff]  ;;  %v245_v22 = vstv %s244_s26  ;;  %s1647_s13 = smov (!%p297_p8, %s298_s13), 4294967295  ;;  %p344_p9 = scmp.gt.s32.totalorder %s1190_s24, 2 }
  0x35   : > { %266 = vperm.xlu1 %915, %v1131_v3   ;;  %256 = vperm.xlu0 %914, %v236_v4   ;;  %v851_v18 = vld [vmem:[%s1118_s18 + $0x78] sm:$0xff]  ;;  %vm1206_vm0 = vcmp.eq.s32.totalorder %v1200_v21, %v245_v22  ;;  %v223_v24 = vld [vmem:[%s210_s9 + $0x10] sm:$0xff]  ;;  %v221_v25 = vld [vmem:[%s210_s9] sm:$0xff]  ;;  %v300_v47 = vstv %s1647_s13  ;;  %s659_s15 = sadd.s32 1, %s1234_s14  ;;  %s661_s16 = sadd.s32 2, %s1234_s14 }
  0x36   : > { %v224_v31 = vld [vmem:[%s210_s9 + $0x18] sm:$0xff]  ;;  %v222_v32 = vld [vmem:[%s210_s9 + $0x8] sm:$0xff]  ;;  %v225_v38 = vld [vmem:[%s210_s9 + $0x20] sm:$0xff]  ;;  %vm1237_vm1 = vcmp.eq.s32.totalorder %v1200_v21, %v300_v47  ;;  %s1247_s17 = sld [smem:[#allocation4 + %s1234_s14]]  ;;  %s345_s20 = sadd.s32 2, %s1194_s25 }
  0x37   : > { %v226_v37 = vld [vmem:[%s210_s9 + $0x28] sm:$0xff]  ;;  %v228_v43 = vld [vmem:[%s210_s9 + $0x38] sm:$0xff]  ;;  %v227_v44 = vld [vmem:[%s210_s9 + $0x30] sm:$0xff]  ;;  %s1251_s18 = sld [smem:[#allocation4 + %s659_s15]]  ;;  %s1649_s20 = smov (!%p344_p9, %s345_s20), 4294967295 }
  0x38   : > { %s1253_s19 = sld [smem:[#allocation4 + %s661_s16]]  ;;  %v347_v62 = vstv %s1649_s20  ;;  %s438_s0 = sadd.s32 2, %s1184_s22 }
  0x39   : > { %276 = vperm.xlu1 %915, %v1136_v5   ;;  %271 = vperm.xlu0 %914, %v239_v6   ;;  %vm1273_vm2 = vcmp.eq.s32.totalorder %v1200_v21, %v347_v62  ;;  %s1304_s26 = sld [smem:[#allocation3 + %s440_s23]]  ;;  %p391_p10 = scmp.gt.s32.totalorder %s1190_s24, 3 }
  0x3a   : > { %s392_s6 = sadd.s32 3, %s1194_s25  ;;  %s1317_s8 = sld [smem:[#allocation3 + %s438_s0]] }
  0x3b   : > { %s1651_s6 = smov (!%p391_p10, %s392_s6), 4294967295  ;;  %s203_s13 = sand.u32 1, %s1004_s27  }
  0x3c   : > { %v394_v22 = vstv %s1651_s6  ;;  %s836_s15 = sshll.u32 %s203_s13, 6 }
  0x3d   : > { %286 = vperm.xlu1 %915, %v1141_v7   ;;  %281 = vperm.xlu0 %914, %v241_v8   ;;  %vm1334_vm3 = vcmp.eq.s32.totalorder %v1200_v21, %v394_v22  ;;  %s1432_s16 = scalar_lea.vmem [#allocation5], %s836_s15 }
  0x3e   : > { %p852_p3 = scmp.le.s32.totalorder %s1253_s19, 0 }
  0x3f   : > { %p451_p11 = scmp.gt.s32.totalorder %s1304_s26, 0  ;;  %p505_p12 = scmp.gt.s32.totalorder %s1304_s26, 1 }
  0x40   : > { %s506_s24 = sadd.s32 1, %s1317_s8  ;;  %p599_p13 = scmp.gt.s32.totalorder %s1304_s26, 3 }
  0x41   : > { %916 = vset.pattern.permute.xlu1 %v1017_v10  ;;  %464 = vperm.xlu0 %914, %v1146_v9   ;;  %s452_s22 = scalar_select %p451_p11, %s1317_s8, 4294967295 }
  0x42   : > { %309 = vperm.xlu1 %916, %v236_v4   ;;  %s1653_s24 = smov (!%p505_p12, %s506_s24), 4294967295  ;;  %p552_p0 = scmp.gt.s32.totalorder %s1304_s26, 2 }
  0x43   : > { %s600_s25 = sadd.s32 3, %s1317_s8  ;;  %s553_s9 = sadd.s32 2, %s1317_s8 }
  0x44   : > { %s1655_s25 = smov (!%p599_p13, %s600_s25), 4294967295  ;;  %s1657_s9 = smov (!%p552_p0, %s553_s9), 4294967295 }
  0x45   : > { %479 = vperm.xlu0 %914, %v1150_v11   ;;  %v555_v22 = vstv %s1657_s9  ;;  %s667_s20 = scalar_lea.vmem (!%p852_p3), %s1432_s16, %s1247_s17 [#allocation5]  ;;  %s678_s23 = sadd.s32 (!%p852_p3), %s1253_s19, %s1251_s18 }
  0x46   : > { %313 = vperm.xlu1 %916, %v237_v1   ;;  %vm1414_vm7 = vcmp.eq.s32.totalorder %v1200_v21, %v555_v22 }
  0x49   : > { %489 = vperm.xlu0 %914, %v1154_v12  }
  0x4a   : > { %321 = vperm.xlu1 %916, %v239_v6  }
  0x4d   : > { %920 = vset.pattern.permute.xlu0 %v1017_v10 }
  0x4e   : > { %329 = vperm.xlu1 %916, %v241_v8   ;;  %305 = vperm.xlu0 %920, %v1127_v2  }
  0x52   : > { %917 = vset.pattern.permute.xlu1 %v1018_v13  ;;  %317 = vperm.xlu0 %920, %v1131_v3  }
  0x53   : > { %352 = vperm.xlu1 %917, %v1127_v2  }
  0x56   : > { %325 = vperm.xlu0 %920, %v1136_v5  }
  0x57   : > { %360 = vperm.xlu1 %917, %v237_v1  }
  0x5a   : > { %333 = vperm.xlu0 %920, %v1141_v7  }
  0x5b   : > { %364 = vperm.xlu1 %917, %v1131_v3  }
  0x5e   : > { %513 = vperm.xlu0 %920, %v844_v14  }
  0x5f   : > { %372 = vperm.xlu1 %917, %v1136_v5  }
  0x62   : > { %525 = vperm.xlu0 %920, %v847_v15  }
  0x63   : > { %380 = vperm.xlu1 %917, %v1141_v7  }
  0x66   : > { %533 = vperm.xlu0 %920, %v849_v16  }
  0x67   : > { %918 = vset.pattern.permute.xlu1 %v1019_v17 }
  0x68   : > { %403 = vperm.xlu1 %918, %v236_v4  }
  0x6a   : > { %541 = vperm.xlu0 %920, %v851_v18  }
  0x6c   : > { %407 = vperm.xlu1 %918, %v237_v1  }
  0x6e   : > { %922 = vset.pattern.permute.xlu0 %v1018_v13 }
  0x6f   : > { %356 = vperm.xlu0 %922, %v236_v4  }
  0x70   : > { %415 = vperm.xlu1 %918, %v239_v6  }
  0x73   : > { %368 = vperm.xlu0 %922, %v239_v6  }
  0x74   : > { %423 = vperm.xlu1 %918, %v241_v8  }
  0x77   : > { %376 = vperm.xlu0 %922, %v241_v8  }
  0x78   : > { %919 = vset.pattern.permute.xlu1 %v1016_v0 }
  0x79   : > { %459 = vperm.xlu1 %919, %v844_v14  }
  0x7b   : > { %564 = vperm.xlu0 %922, %v1146_v9  }
  0x7d   : > { %469 = vperm.xlu1 %919, %v1172_v19  }
  0x7f   : > { %576 = vperm.xlu0 %922, %v1150_v11  }
  0x81   : > { %474 = vperm.xlu1 %919, %v847_v15  }
  0x83   : > { %584 = vperm.xlu0 %922, %v1154_v12  }
  0x85   : > { %484 = vperm.xlu1 %919, %v849_v16  }
  0x87   : > { %924 = vset.pattern.permute.xlu0 %v1019_v17 }
  0x88   : > { %399 = vperm.xlu0 %924, %v1127_v2  }
  0x89   : > { %494 = vperm.xlu1 %919, %v851_v18  }
  0x8c   : > { %411 = vperm.xlu0 %924, %v1131_v3  }
  0x8d   : > { %921 = vset.pattern.permute.xlu1 %v1017_v10 }
  0x8e   : > { %517 = vperm.xlu1 %921, %v1146_v9  }
  0x90   : > { %419 = vperm.xlu0 %924, %v1136_v5  }
  0x92   : > { %521 = vperm.xlu1 %921, %v1172_v19  }
  0x94   : > { %427 = vperm.xlu0 %924, %v1141_v7  }
  0x96   : > { %529 = vperm.xlu1 %921, %v1150_v11  }
  0x98   : > { %607 = vperm.xlu0 %924, %v844_v14  }
  0x9a   : > { %537 = vperm.xlu1 %921, %v1154_v12  }
  0x9c   : > { %619 = vperm.xlu0 %924, %v847_v15  }
  0x9e   : > { %923 = vset.pattern.permute.xlu1 %v1018_v13 }
  0x9f   : > { %560 = vperm.xlu1 %923, %v844_v14  }
  0xa0   : > { %627 = vperm.xlu0 %924, %v849_v16  }
  0xa3   : > { %568 = vperm.xlu1 %923, %v1172_v19  }
  0xa4   : > { %635 = vperm.xlu0 %924, %v851_v18  }
  0xa7   : > { %572 = vperm.xlu1 %923, %v847_v15  }
  0xab   : > { %580 = vperm.xlu1 %923, %v849_v16  }
  0xac   : > { %v262_v26 = vpop.permute.xlu1 %261  ;;  %v252_v27 = vpop.permute.xlu0 %251 }
  0xad   : > { %v291_v28 = vsel %vm1206_vm0, %v262_v26, %v223_v24  ;;  %v289_v29 = vsel %vm1206_vm0, %v252_v27, %v221_v25  ;;  %v453_v27 = vstv %s452_s22 }
  0xae   : > { %vm1343_vm4 = vcmp.eq.s32.totalorder %v1200_v21, %v453_v27 }
  0xaf   : > { %588 = vperm.xlu1 %923, %v851_v18  }
  0xb0   : > { %v267_v33 = vpop.permute.xlu1 %266  ;;  %v257_v34 = vpop.permute.xlu0 %256 }
  0xb1   : > { %v292_v35 = vsel %vm1206_vm0, %v267_v33, %v224_v31  ;;  %v290_v36 = vsel %vm1206_vm0, %v257_v34, %v222_v32 }
  0xb3   : > { %925 = vset.pattern.permute.xlu1 %v1019_v17 }
  0xb4   : > { %v277_v39 = vpop.permute.xlu1 %276  ;;  %611 = vperm.xlu1 %925, %v1146_v9   ;;  %v272_v40 = vpop.permute.xlu0 %271 }
  0xb5   : > { %v294_v41 = vsel %vm1206_vm0, %v277_v39, %v226_v37  ;;  %v293_v42 = vsel %vm1206_vm0, %v272_v40, %v225_v38 }
  0xb8   : > { %v287_v45 = vpop.permute.xlu1 %286  ;;  %615 = vperm.xlu1 %925, %v1172_v19   ;;  %v282_v46 = vpop.permute.xlu0 %281 }
  0xb9   : > { %v296_v48 = vsel %vm1206_vm0, %v287_v45, %v228_v43  ;;  %v295_v49 = vsel %vm1206_vm0, %v282_v46, %v227_v44 }
  0xbc   : > { %623 = vperm.xlu1 %925, %v1150_v11   ;;  %v1242_v51 = vpop.permute.xlu0 %464 }
  0xbd   : > { %v310_v52 = vpop.permute.xlu1 %309 }
  0xbe   : > { %v337_v53 = vsel %vm1237_vm1, %v310_v52, %v290_v36 }
  0xc0   : > { %631 = vperm.xlu1 %925, %v1154_v12   ;;  %v1256_v54 = vpop.permute.xlu0 %479 }
  0xc1   : > { %v314_v55 = vpop.permute.xlu1 %313 }
  0xc2   : > { %v338_v56 = vsel %vm1237_vm1, %v314_v55, %v291_v28 }
  0xc4   : > { %v1262_v57 = vpop.permute.xlu0 %489 }
  0xc5   : > { %v322_v58 = vpop.permute.xlu1 %321 }
  0xc6   : > { %v340_v59 = vsel %vm1237_vm1, %v322_v58, %v293_v42 }
  0xc9   : > { %v330_v60 = vpop.permute.xlu1 %329  ;;  %v306_v61 = vpop.permute.xlu0 %305 }
  0xca   : > { %v342_v63 = vsel %vm1237_vm1, %v330_v60, %v295_v49  ;;  %v1270_v0 = vsel %vm1237_vm1, %v306_v61, %v289_v29 }
  0xcd   : > { %v318_v2 = vpop.permute.xlu0 %317 }
  0xce   : > { %v1279_v3 = vsel %vm1237_vm1, %v318_v2, %v292_v35  ;;  %v1281_v4 = vpop.permute.xlu1 %352  ;;  %v508_v2 = vstv %s1653_s24 }
  0xcf   : > { %v383_v5 = vsel %vm1273_vm2, %v1281_v4, %v1270_v0  ;;  %vm1402_vm5 = vcmp.eq.s32.totalorder %v1200_v21, %v508_v2 }
  0xd1   : > { %v326_v6 = vpop.permute.xlu0 %325 }
  0xd2   : > { %v1289_v7 = vsel %vm1237_vm1, %v326_v6, %v294_v41  ;;  %v361_v8 = vpop.permute.xlu1 %360 }
  0xd3   : > { %v385_v9 = vsel %vm1273_vm2, %v361_v8, %v338_v56  ;;  %v602_v8 = vstv %s1655_s25 }
  0xd4   : > { %vm1409_vm6 = vcmp.eq.s32.totalorder %v1200_v21, %v602_v8 }
  0xd5   : > { %v334_v10 = vpop.permute.xlu0 %333 }
  0xd6   : > { %v1296_v11 = vsel %vm1237_vm1, %v334_v10, %v296_v48  ;;  %v1298_v12 = vpop.permute.xlu1 %364 }
  0xd7   : > { %v386_v13 = vsel %vm1273_vm2, %v1298_v12, %v1279_v3 }
  0xd9   : > { %v1307_v14 = vpop.permute.xlu0 %513 }
  0xda   : > { %v1309_v15 = vpop.permute.xlu1 %372 }
  0xdb   : > { %v388_v16 = vsel %vm1273_vm2, %v1309_v15, %v1289_v7 }
  0xdd   : > { %v1319_v17 = vpop.permute.xlu0 %525 }
  0xde   : > { %v1321_v18 = vpop.permute.xlu1 %380 }
  0xdf   : > { %v390_v19 = vsel %vm1273_vm2, %v1321_v18, %v1296_v11 }
  0xe1   : > { %v1328_v20 = vpop.permute.xlu0 %533 }
  0xe3   : > { %v404_v23 = vpop.permute.xlu1 %403 }
  0xe5   : > { %v1331_v24 = vpop.permute.xlu0 %541 }
  0xe7   : > { %v408_v26 = vpop.permute.xlu1 %407 }
  0xe8   : > { %v1340_v28 = vsel %vm1334_vm3, %v408_v26, %v385_v9 }
  0xea   : > { %v357_v29 = vpop.permute.xlu0 %356 }
  0xeb   : > { %v384_v32 = vsel %vm1273_vm2, %v357_v29, %v337_v53  ;;  %v416_v33 = vpop.permute.xlu1 %415 }
  0xec   : > { %v1351_v34 = vsel %vm1334_vm3, %v404_v23, %v384_v32 }
  0xed   : > { %v498_v35 = vsel %vm1343_vm4, %v1242_v51, %v1351_v34 }
  0xee   : > { %v369_v36 = vpop.permute.xlu0 %368 }
  0xef   : > { %v387_v37 = vsel %vm1273_vm2, %v369_v36, %v340_v59  ;;  %v424_v38 = vpop.permute.xlu1 %423 }
  0xf0   : > { %v1361_v39 = vsel %vm1334_vm3, %v416_v33, %v387_v37 }
  0xf1   : > { %v501_v40 = vsel %vm1343_vm4, %v1256_v54, %v1361_v39 }
  0xf2   : > { %v377_v41 = vpop.permute.xlu0 %376 }
  0xf3   : > { %v389_v42 = vsel %vm1273_vm2, %v377_v41, %v342_v63 }
  0xf4   : > { %v1371_v43 = vsel %vm1334_vm3, %v424_v38, %v389_v42  ;;  %v460_v44 = vpop.permute.xlu1 %459 }
  0xf5   : > { %v503_v45 = vsel %vm1343_vm4, %v1262_v57, %v1371_v43 }
  0xf6   : > { %v1377_v46 = vpop.permute.xlu0 %564 }
  0xf8   : > { %v1379_v47 = vpop.permute.xlu1 %469 }
  0xf9   : > { %v499_v51 = vsel %vm1343_vm4, %v1379_v47, %v1340_v28 }
  0xfa   : > { %v1381_v48 = vpop.permute.xlu0 %576 }
  0xfc   : > { %v475_v49 = vpop.permute.xlu1 %474 }
  0xfe   : > { %v1383_v50 = vpop.permute.xlu0 %584 }
 0x100   : > { %v485_v52 = vpop.permute.xlu1 %484 }
 0x103   : > { %v400_v53 = vpop.permute.xlu0 %399 }
 0x104   : > { %v495_v55 = vpop.permute.xlu1 %494  ;;  %v430_v63 = vsel %vm1334_vm3, %v400_v53, %v383_v5 }
 0x105   : > { %v497_v9 = vsel %vm1343_vm4, %v460_v44, %v430_v63 }
 0x106   : > { %v544_v26 = vsel %vm1402_vm5, %v1307_v14, %v497_v9 }
 0x107   : > { %v412_v56 = vpop.permute.xlu0 %411 }
 0x108   : > { %v433_v21 = vsel %vm1334_vm3, %v412_v56, %v386_v13 }
 0x109   : > { %v518_v58 = vpop.permute.xlu1 %517  ;;  %v500_v32 = vsel %vm1343_vm4, %v475_v49, %v433_v21 }
 0x10a   : > { %v547_v13 = vsel %vm1402_vm5, %v1319_v17, %v500_v32  ;;  %v545_v42 = vsel %vm1402_vm5, %v518_v58, %v498_v35 }
 0x10b   : > { %v420_v59 = vpop.permute.xlu0 %419  ;;  %v592_v49 = vsel %vm1414_vm7, %v1377_v46, %v545_v42 }
 0x10c   : > { %v435_v3 = vsel %vm1334_vm3, %v420_v59, %v388_v16 }
 0x10d   : > { %v522_v60 = vpop.permute.xlu1 %521  ;;  %v502_v36 = vsel %vm1343_vm4, %v485_v52, %v435_v3 }
 0x10e   : > { %v549_v38 = vsel %vm1402_vm5, %v1328_v20, %v502_v36  ;;  %v546_v34 = vsel %vm1402_vm5, %v522_v60, %v499_v51 }
 0x10f   : > { %v428_v62 = vpop.permute.xlu0 %427 }
 0x110   : > { %v437_v7 = vsel %vm1334_vm3, %v428_v62, %v390_v19 }
 0x111   : > { %v530_v61 = vpop.permute.xlu1 %529  ;;  %v504_v1 = vsel %vm1343_vm4, %v495_v55, %v437_v7 }
 0x112   : > { %v551_v25 = vsel %vm1402_vm5, %v1331_v24, %v504_v1  ;;  %v548_v46 = vsel %vm1402_vm5, %v530_v61, %v501_v40 }
 0x113   : > { %v608_v23 = vpop.permute.xlu0 %607  ;;  %v595_v55 = vsel %vm1414_vm7, %v1381_v48, %v548_v46 }
 0x115   : > { %v538_v6 = vpop.permute.xlu1 %537 }
 0x116   : > { %v550_v54 = vsel %vm1402_vm5, %v538_v6, %v503_v45 }
 0x117   : > { %v620_v33 = vpop.permute.xlu0 %619  ;;  %v597_v56 = vsel %vm1414_vm7, %v1383_v50, %v550_v54 }
 0x11a   : > { %v561_v5 = vpop.permute.xlu1 %560 }
 0x11b   : > { %v591_v27 = vsel %vm1414_vm7, %v561_v5, %v544_v26  ;;  %v628_v16 = vpop.permute.xlu0 %627 }
 0x11c   : > { %v638_v29 = vsel %vm1409_vm6, %v608_v23, %v591_v27 }
 0x11d   : > { %647 = vst.msk [vmem:[%s1432_s16] sm:$0xff] %vm646_vm8, %v638_v29 }
 0x11e   : > { %v569_v14 = vpop.permute.xlu1 %568 }
 0x11f   : > { %v636_v41 = vpop.permute.xlu0 %635  ;;  %v593_v35 = vsel %vm1414_vm7, %v569_v14, %v546_v34 }
 0x122   : > { %v573_v12 = vpop.permute.xlu1 %572 }
 0x123   : > { %v594_v37 = vsel %vm1414_vm7, %v573_v12, %v547_v13 }
 0x124   : > { %v641_v15 = vsel %vm1409_vm6, %v620_v33, %v594_v37 }
 0x125   : > { %650 = vst.msk [vmem:[%s1432_s16 + $0x18] sm:$0xff] %vm646_vm8, %v641_v15 }
 0x126   : > { %v581_v17 = vpop.permute.xlu1 %580 }
 0x127   : > { %v596_v11 = vsel %vm1414_vm7, %v581_v17, %v549_v38 }
 0x128   : > { %v643_v18 = vsel %vm1409_vm6, %v628_v16, %v596_v11 }
 0x129   : > { %652 = vst.msk [vmem:[%s1432_s16 + $0x28] sm:$0xff] %vm646_vm8, %v643_v18 }
 0x12a   : > { %v589_v19 = vpop.permute.xlu1 %588 }
 0x12b   : > { %v598_v20 = vsel %vm1414_vm7, %v589_v19, %v551_v25 }
 0x12c   : > { %v645_v44 = vsel %vm1409_vm6, %v636_v41, %v598_v20 }
 0x12d   : > { %654 = vst.msk [vmem:[%s1432_s16 + $0x38] sm:$0xff] %vm646_vm8, %v645_v44 }
 0x12f   : > { %v612_v24 = vpop.permute.xlu1 %611 }
 0x130   : > { %v639_v52 = vsel %vm1409_vm6, %v612_v24, %v592_v49 }
 0x131   : > { %648 = vst.msk [vmem:[%s1432_s16 + $0x8] sm:$0xff] %vm646_vm8, %v639_v52 }
 0x133   : > { %v616_v53 = vpop.permute.xlu1 %615 }
 0x134   : > { %v640_v28 = vsel %vm1409_vm6, %v616_v53, %v593_v35 }
 0x135   : > { %649 = vst.msk [vmem:[%s1432_s16 + $0x10] sm:$0xff] %vm646_vm8, %v640_v28 }
 0x137   : > { %v624_v47 = vpop.permute.xlu1 %623 }
 0x138   : > { %v642_v39 = vsel %vm1409_vm6, %v624_v47, %v595_v55 }
 0x139   : > { %651 = vst.msk [vmem:[%s1432_s16 + $0x20] sm:$0xff] %vm646_vm8, %v642_v39  ;;  %666 = sbr.rel (%p852_p3) target bundleno = 328 (0x148), region = 36 }
 0x13b   : > { %v632_v40 = vpop.permute.xlu1 %631 }
 0x13c   : > { %v644_v48 = vsel %vm1409_vm6, %v632_v40, %v597_v56 }
 0x13d   : > { %653 = vst.msk [vmem:[%s1432_s16 + $0x30] sm:$0xff] %vm646_vm8, %v644_v48 }
 0x13e   : > { %v672_v57 = vld [vmem:[%s1123_s21] sm:$0xf]  ;;  %v676_v31 = vstv %s1251_s18  ;;  %vm688_vm9 = vcmask 125952   ;;  %v673_v43 = vld [vmem:[%s1123_s21 + $0x4] sm:$0xf]  ;;  %v679_v50 = vstv %s678_s23 }
 0x13f   : > { %vm677_vm10 = vcmp.ge.s32.totalorder %v1214_v30, %v676_v31  ;;  %vm680_vm11 = vcmp.lt.s32.totalorder %v1214_v30, %v679_v50  ;;  %v674_v60 = vld [vmem:[%s1123_s21 + $0x8] sm:$0xf]  ;;  %v675_v62 = vld [vmem:[%s1123_s21 + $0xc] sm:$0xf] }
 0x140   : > { %vm681_vm12 = vmand %vm677_vm10, %vm680_vm11 }
 0x144   : > { %v668_v45 = vld [vmem:[%s667_s20] sm:$0xf]  ;;  %v669_v58 = vld [vmem:[%s667_s20 + $0x10] sm:$0xf] }
 0x145   : > { %v670_v59 = vld [vmem:[%s667_s20 + $0x20] sm:$0xf]  ;;  %v671_v61 = vld [vmem:[%s667_s20 + $0x30] sm:$0xf]  ;;  %v684_v63 = vsel %vm681_vm12, %v672_v57, %v668_v45  ;;  %v685_v2 = vsel %vm681_vm12, %v673_v43, %v669_v58 }
 0x146   : > { %v686_v6 = vsel %vm681_vm12, %v674_v60, %v670_v59  ;;  %v687_v8 = vsel %vm681_vm12, %v675_v62, %v671_v61  ;;  %689 = vst.msk [vmem:[%s667_s20] sm:$0xf] %vm688_vm9, %v684_v63  ;;  %690 = vst.msk [vmem:[%s667_s20 + $0x10] sm:$0xf] %vm688_vm9, %v685_v2 }
 0x147   : > { %691 = vst.msk [vmem:[%s667_s20 + $0x20] sm:$0xf] %vm688_vm9, %v686_v6  ;;  %692 = vst.msk [vmem:[%s667_s20 + $0x30] sm:$0xf] %vm688_vm9, %v687_v8 }
 0x148 PF: > { %s693_s17 = sadd.s32 3, %s1234_s14  ;;  %s695_s18 = sadd.s32 4, %s1234_s14 }
 0x149   : > { %s694_s19 = sld [smem:[#allocation4 + %s693_s17]]  ;;  %s697_s26 = sadd.s32 5, %s1234_s14 }
 0x14a   : > { %s696_s0 = sld [smem:[#allocation4 + %s695_s18]] }
 0x14b   : > { %s698_s6 = sld [smem:[#allocation4 + %s697_s26]] }
 0x151   : > { %p853_p4 = scmp.le.s32.totalorder %s698_s6, 0 }
 0x152   : > { %s703_s8 = scalar_lea.vmem (!%p853_p4), %s1432_s16, %s694_s19 [#allocation5]  ;;  %s715_s22 = sadd.s32 (!%p853_p4), %s698_s6, %s696_s0 }
 0x153   : > { %702 = sbr.rel (%p853_p4) target bundleno = 351 (0x15f), region = 40 }
 0x158   : > { %v854_v9 = vld [vmem:[%s1123_s21 + $0x10] sm:$0xf]  ;;  %v713_v10 = vstv %s696_s0  ;;  %vm725_vm13 = vcmask 125952   ;;  %v855_v22 = vld [vmem:[%s1123_s21 + $0x14] sm:$0xf]  ;;  %v716_v0 = vstv %s715_s22 }
 0x159   : > { %v704_v23 = vld [vmem:[%s703_s8] sm:$0xf]  ;;  %vm714_vm14 = vcmp.ge.s32.totalorder %v1214_v30, %v713_v10  ;;  %v705_v4 = vld [vmem:[%s703_s8 + $0x10] sm:$0xf]  ;;  %vm717_vm15 = vcmp.lt.s32.totalorder %v1214_v30, %v716_v0  ;;  %v856_v26 = vld [vmem:[%s1123_s21 + $0x18] sm:$0xf] }
 0x15a   : > { %v706_v5 = vld [vmem:[%s703_s8 + $0x20] sm:$0xf]  ;;  %v707_v27 = vld [vmem:[%s703_s8 + $0x30] sm:$0xf]  ;;  %v857_v21 = vld [vmem:[%s1123_s21 + $0x1c] sm:$0xf] }
 0x15b   : > { %vm718_vm0 = vmand %vm714_vm14, %vm717_vm15 }
 0x15c   : > { %v721_v29 = vsel %vm718_vm0, %v854_v9, %v704_v23  ;;  %v722_v14 = vsel %vm718_vm0, %v855_v22, %v705_v4  ;;  %v723_v32 = vsel %vm718_vm0, %v856_v26, %v706_v5  ;;  %v724_v33 = vsel %vm718_vm0, %v857_v21, %v707_v27 }
 0x15d   : > { %726 = vst.msk [vmem:[%s703_s8] sm:$0xf] %vm725_vm13, %v721_v29  ;;  %727 = vst.msk [vmem:[%s703_s8 + $0x10] sm:$0xf] %vm725_vm13, %v722_v14 }
 0x15e   : > { %728 = vst.msk [vmem:[%s703_s8 + $0x20] sm:$0xf] %vm725_vm13, %v723_v32  ;;  %729 = vst.msk [vmem:[%s703_s8 + $0x30] sm:$0xf] %vm725_vm13, %v724_v33 }
 0x15f PF: > { %s866_s14 = sshll.u32 %s1080_s30, 10  ;;  %s744_s9 = sshll.u32 %s1432_s16, 4  ;;  %s1574_s9 = int_to_ptr.vmem [resolvable:$true] %s744_s9 }
 0x160   : > { %s1571_s25 = scalar_lea.hbm %s1622_s5, %s866_s14  ;;  %s1578_s15 = scalar_lea.sflag [#allocation6], %s203_s13 }
 0x161   : > { %s950_s20 = scalar_lea.vmem %s1574_s9, 1024  ;;  %s1020_s30 = smov [#allocation5]  }
 0x162   : > { %p951_p5 = scmp.ne.s32.totalorder %s1574_s9, %s950_s20  ;;  %s954_s23 = sshll.u32 %s1020_s30, 4  ;;  %s955_s23 = int_to_ptr.vmem [resolvable:$false] %s954_s23 }
 0x163   : > { %s956_s17 = scalar_lea.vmem %s955_s23, 2048  ;;  %p957_p8 = scmp.lt.s32.totalorder %s1574_s9, %s955_s23 }
 0x164   : > { %p952_p6 = pnand %p951_p5, %p1097_p1  ;;  %p958_p9 = scmp.lt.s32.totalorder %s956_s17, %s950_s20 }
 0x166   : > { %p953_p7 = pneg %p952_p6  ;;  %p959_p10 = por %p958_p9, %p957_p8 }
 0x168   : > { %p960_p11 = pnand %p959_p10, %p953_p7 }
 0x16a   : > { %963 = shalt.err (!%p960_p11)
}
 0x16b   : > { %s964_s13 = scalar_lea.hbm %s1571_s25, 1024  ;;  %s968_s19 = scalar_lea.hbm %s1622_s5, 2048 }
 0x16c   : > { %p965_p12 = scmp.ne.s32.totalorder %s1571_s25, %s964_s13  ;;  %p969_p3 = scmp.lt.s32.totalorder %s1571_s25, %s1622_s5 }
 0x16d   : > { %p970_p4 = scmp.lt.s32.totalorder %s968_s19, %s964_s13 }
 0x16e   : > { %p966_p13 = pnand %p965_p12, %p1097_p1 }
 0x16f   : > { %p971_p5 = por %p970_p4, %p969_p3 }
 0x170   : > { %p967_p0 = pneg %p966_p13 }
 0x172   : > { %p972_p6 = pnand %p971_p5, %p967_p0 }
 0x174   : > { %975 = shalt.err (!%p972_p6)
}
 0x175   : > { %s1021_s6 = smov 128   ;;  %s1022_s8 = smov 8  }
 0x176   : > { %867 = dma.vmem_to_hbm [thread:$0]  (%p1097_p1), %s1574_s9, 1024, %s1571_s25, %s1578_s15, %s1021_s6, %s1021_s6, %s1022_s8  }
 0x177 PF: > { %p873_p7 = scmp.ge.s32.totalorder %s1012_s29, 2  ;;  %s759_s22 = sand.u32 1, %s1000_s1  }
 0x178   : > { %s760_s14 = scalar_lea.sflag [#allocation6], %s759_s22 }
 0x179   : > { %p870_p8 = pnand %p873_p7, %p1101_p2 }
 0x17b   : > { %p871_p9 = pneg %p870_p8 }
 0x17d   : > { %995 = dma.done.wait (%p871_p9), %s760_s14, 1024  }
 0x17e   : > { %997 = vsyncadd (%p871_p9), %s760_s14, 4294966272  ;;  %p25_p10 = scmp.ge.s32.totalorder %s1084_s7, 4   ;;  %s1642_s1 = smov %s1004_s27 }
 0x17f   : > { %s1643_s27 = smov %s1008_s28  ;;  %s1644_s28 = smov %s1095_s10 }
 0x180   : > { %s1645_s29 = smov %s1084_s7  ;;  %27 = sbr.rel (!%p25_p10) target bundleno = 28 (0x1c), region = 85 }
 0x185   :  { %765 = vsyncpa [#allocation6], 1 }
 0x186   :  { %767 = vsyncpa [#allocation6 + $0x1], 1 }

</bundles_post_ra>
